<compile_context>
chip_gen: v6e
topology: v6e:2x2x1
jax: 0.10.0
libtpu: 0.0.40
codegen_flags: <defaults>
</compile_context>

<pallas_src>
import jax
import jax.numpy as jnp
import numpy as np
from jax.experimental import pallas as pl
from jax.experimental.pallas import tpu as pltpu

_INTER_W = 0.1 / 3.0  # weight of the "inter" term in the original loss


def _make_center_loss_kernel(tb, num_classes, true_b, mask_rows):
    """Kernel over one row-tile of features. Emits a per-tile partial sum."""
    w = _INTER_W

    def kernel(label_ref, feat_ref, cent_t_ref, cn_ref, out_ref):
        f = feat_ref[...]          # (tb, D)   native float dtype
        ct = cent_t_ref[...]       # (D, C)    centers, pre-transposed
        lbl = label_ref[...]       # (tb, 1)   int32 (-1 for padded rows)
        cn = cn_ref[...]           # (1, C)    f32, precomputed ||c||^2

        # Cross term on the MXU: (tb, D) @ (D, C) -> (tb, C), f32 accumulate.
        g = jnp.dot(f, ct, preferred_element_type=jnp.float32)

        # Row squared norms: square in the native dtype, accumulate in f32.
        # (Avoids materializing a full-tile f32 copy of `f`.)
        fn = jnp.sum(f * f, axis=1, dtype=jnp.float32, keepdims=True)   # (tb, 1)

        # ||f - c||^2 via the expansion; clamp cancellation to >= 0.
        dist = jnp.maximum(fn + cn - 2.0 * g, 0.0)                      # (tb, C)

        if mask_rows:
            # Zero out padded rows (global row index >= true batch size).
            row = (pl.program_id(0) * tb
                   + jax.lax.broadcasted_iota(jnp.int32, (tb, 1), 0))
            dist = jnp.where(row < true_b, dist, 0.0)

        # One-hot of each sample's own center (padded rows: label=-1 -> all 0).
        col = jax.lax.broadcasted_iota(jnp.int32, (tb, num_classes), 1)
        onehot = (col == lbl).astype(jnp.float32)                       # (tb, C)

        # intra - w*inter = (1+w)*intra - w*total  (per tile, unscaled).
        total = jnp.sum(dist, keepdims=True)                            # (1, 1)
        intra = jnp.sum(dist * onehot, keepdims=True)                   # (1, 1)
        out_ref[0, :, :] = (1.0 + w) * intra - w * total

    return kernel


def _vmem_limit_bytes():
    """Scoped VMEM limit from device capacity (v7x-safe fallback)."""
    cap = 0
    try:
        info = pltpu.get_tpu_info()
        cap = int(getattr(info, "vmem_capacity_bytes", 0) or 0)
    except Exception:
        cap = 0
    if cap <= 0:
        cap = 64 * 1024 * 1024          # assume smallest (v7x per-TC) VMEM
    # ~48 MiB on v7x (64 MiB physical), ~96 MiB on v5e/v6e (128 MiB physical).
    return int(min(cap * 3 // 4, 96 * 1024 * 1024))


def _pick_row_tile(b, d, itemsize, vmem_limit):
    """Row-tile size chosen purely by a per-row VMEM byte model."""
    sub = 8 * max(1, 4 // itemsize)     # sublane packing: 8 f32 / 16 bf16 / 32 int8
    # Conservative steady-state VMEM bytes per feature row:
    #   2x double-buffered feat input             : 2 * d * itemsize
    #   elementwise-square temp (worst case f32)  : d * 4
    #   label double-buffer (lane padded to 128)  : 2 * 128 * 4
    #   ~8 lane-padded (tb, 128) f32 temps (g, dist, onehot, masks, products)
    per_row = d * (2 * itemsize + 4) + 2 * 128 * 4 + 8 * 128 * 4
    slack = 4 * 1024 * 1024             # centers^T, cn, outputs, misc scratch
    budget = max(vmem_limit - slack, 2 * 1024 * 1024)

    tb = budget // per_row
    tb = max(sub, (tb // sub) * sub)
    tb = min(tb, 8192)                  # keep per-step latency reasonable

    b_pad = -(-b // sub) * sub
    tb = min(tb, b_pad)
    # Guarantee >= 2 grid tiles when the batch allows it, so the "parallel"
    # grid axis populates both v7x TensorCores.
    if tb >= b_pad and b_pad > sub:
        tb = max(sub, -(-(b_pad // 2) // sub) * sub)
    return tb


def center_loss(label, feat, centers, size_average=True):
    """Forward pass of CenterLoss. Returns (loss of shape (1,), centers)."""
    b = feat.shape[0]
    d_flat = int(np.prod(feat.shape[1:]))
    c, d = centers.shape
    if d != d_flat:
        raise ValueError(
            "Center's dim: {0} should be equal to input feature's dim: {1}".format(d, d_flat)
        )

    # Stream in native floating dtype (bf16 stays bf16 -> half the HBM traffic);
    # only force f32 for non-float inputs.
    if not jnp.issubdtype(feat.dtype, jnp.floating):
        feat = feat.astype(jnp.float32)
    if not jnp.issubdtype(centers.dtype, jnp.floating):
        centers = centers.astype(jnp.float32)

    feat2 = feat.reshape(b, d_flat)
    cent_t = centers.T                                       # (D, C), tiny one-time transpose
    # Precompute center squared norms once (resident (1, C) f32 input).
    cn = jnp.sum(centers.astype(jnp.float32) ** 2, axis=1).reshape(1, c)

    itemsize = int(jnp.dtype(feat2.dtype).itemsize)
    vmem_limit = _vmem_limit_bytes()
    tb = _pick_row_tile(b, d_flat, itemsize, vmem_limit)
    num_tiles = -(-b // tb)                                  # cdiv
    b_pad = num_tiles * tb

    label2 = label.astype(jnp.int32).reshape(b, 1)
    if b_pad != b:
        feat2 = jnp.pad(feat2, ((0, b_pad - b), (0, 0)))
        label2 = jnp.pad(label2, ((0, b_pad - b), (0, 0)), constant_values=-1)

    batch_scale = float(b) if size_average else 1.0
    kernel = _make_center_loss_kernel(tb, c, b, b_pad != b)

    flops = 2 * b_pad * d_flat * c + 3 * b_pad * d_flat + 8 * b_pad * c
    bytes_accessed = (b_pad * d_flat * itemsize
                      + b_pad * 4
                      + num_tiles * c * d_flat * int(jnp.dtype(cent_t.dtype).itemsize)
                      + num_tiles * c * 4
                      + num_tiles * 4)

    partials = pl.pallas_call(
        kernel,
        out_shape=jax.ShapeDtypeStruct((num_tiles, 1, 1), jnp.float32),
        grid_spec=pltpu.PrefetchScalarGridSpec(
            num_scalar_prefetch=0,
            grid=(num_tiles,),
            in_specs=[
                pl.BlockSpec((tb, 1), lambda i: (i, 0)),         # labels (tiled)
                pl.BlockSpec((tb, d_flat), lambda i: (i, 0)),    # features (tiled)
                pl.BlockSpec((d_flat, c), lambda i: (0, 0)),     # centers^T (resident)
                pl.BlockSpec((1, c), lambda i: (0, 0)),          # ||c||^2 (resident)
            ],
            out_specs=pl.BlockSpec((1, 1, 1), lambda i: (i, 0, 0)),
        ),
        compiler_params=pltpu.CompilerParams(
            dimension_semantics=("parallel",),
            vmem_limit_bytes=int(vmem_limit),
        ),
        cost_estimate=pl.CostEstimate(
            flops=int(flops), transcendentals=0, bytes_accessed=int(bytes_accessed)),
    )(label2, feat2, cent_t, cn)

    # Tiny final reduction + single fused scale (0.5 / batch) in the wrapper.
    loss = jnp.sum(partials) * jnp.float32(0.5 / batch_scale)
    return loss.reshape(1), centers


def _reference(label, feat, centers, size_average=True):
    b = feat.shape[0]
    f = feat.reshape(b, -1).astype(jnp.float32)
    dist = jnp.sum((f[:, None, :] - centers[None, :, :]) ** 2, axis=-1)  # (B, C)
    mask = jax.nn.one_hot(label, centers.shape[0], dtype=jnp.float32)
    intra = jnp.sum(dist * mask)
    inter = jnp.sum(dist * (1.0 - mask))
    bs = float(b) if size_average else 1.0
    return ((intra - _INTER_W * inter) / 2.0 / bs).reshape(1)


if __name__ == "__main__":
    key = jax.random.PRNGKey(0)
    k1, k2, k3 = jax.random.split(key, 3)

    # Small, module-consistent shapes: feat is NCHW, flattened to feat_dim.
    B, Cin, H, W = 2, 4, 16, 16
    num_classes = 4                # hardcoded by the original forward's expand(4, ...)
    feat_dim = Cin * H * W         # 1024

    x = jax.random.normal(k1, (B, Cin, H, W), dtype=jnp.float32)
    label = jax.random.randint(k2, (B,), 0, num_classes, dtype=jnp.int32)
    centers = jax.random.normal(k3, (num_classes, feat_dim), dtype=jnp.float32)

    loss, centers_out = center_loss(label, x, centers)
    jax.block_until_ready(loss)

    ref = _reference(label, x, centers)
    np.testing.assert_allclose(np.asarray(loss), np.asarray(ref), rtol=1e-3, atol=1e-3)

    # TODO(synk): custom backward (CenterlossFunc.backward) not implemented; forward only.
    print("KERNEL_OK")
</pallas_src>

<mosaic_0001>
module attributes {stable_mosaic.version = 11 : i64} {
  func.func @kernel(%arg0: i32, %arg1: memref<8x1xi32, #tpu.memory_space<vmem>>, %arg2: memref<8x1024xf32, #tpu.memory_space<vmem>>, %arg3: memref<1024x4xf32, #tpu.memory_space<vmem>>, %arg4: memref<1x4xf32, #tpu.memory_space<vmem>>, %arg5: memref<1x1x1xf32, #tpu.memory_space<vmem>>) attributes {dimension_semantics = [#tpu.dimension_semantics<parallel>], iteration_bounds = array<i64: 1>, scalar_prefetch = 0 : i64, scratch_operands = 0 : i64, tpu.core_type = #tpu.core_type<tc>, window_params = [{transform_indices = @transform_0, window_bounds = array<i64: 8, 1>}, {transform_indices = @transform_1, window_bounds = array<i64: 8, 1024>}, {pipeline_mode = #tpu.pipeline_mode<synchronous>, transform_indices = @transform_2, window_bounds = array<i64: 1024, 4>}, {pipeline_mode = #tpu.pipeline_mode<synchronous>, transform_indices = @transform_3, window_bounds = array<i64: 1, 4>}, {transform_indices = @transform_4, window_bounds = array<i64: 1, 1, 1>}]} {
    %c0 = arith.constant 0 : index
    %c0_0 = arith.constant 0 : index
    %0 = vector.load %arg2[%c0, %c0_0] : memref<8x1024xf32, #tpu.memory_space<vmem>>, vector<8x1024xf32>
    %c0_1 = arith.constant 0 : index
    %c0_2 = arith.constant 0 : index
    %1 = vector.load %arg3[%c0_1, %c0_2] : memref<1024x4xf32, #tpu.memory_space<vmem>>, vector<1024x4xf32>
    %c0_3 = arith.constant 0 : index
    %c0_4 = arith.constant 0 : index
    %2 = vector.load %arg1[%c0_3, %c0_4] : memref<8x1xi32, #tpu.memory_space<vmem>>, vector<8x1xi32>
    %c0_5 = arith.constant 0 : index
    %c0_6 = arith.constant 0 : index
    %3 = vector.load %arg4[%c0_5, %c0_6] : memref<1x4xf32, #tpu.memory_space<vmem>>, vector<1x4xf32>
    %cst = arith.constant dense<0.000000e+00> : vector<8x4xf32>
    %4 = tpu.matmul %0, %1, %cst {dimension_numbers = #tpu.dot_dimension_numbers<[1], [0], [0], [1], [0, 0, 1, 1], [], []>} : vector<8x1024xf32>, vector<1024x4xf32>, vector<8x4xf32> -> vector<8x4xf32>
    %5 = arith.mulf %0, %0 : vector<8x1024xf32>
    %cst_7 = arith.constant dense<0.000000e+00> : vector<8xf32>
    %6 = vector.multi_reduction <add>, %5, %cst_7 [1] : vector<8x1024xf32> to vector<8xf32>
    %7 = vector.shape_cast %6 : vector<8xf32> to vector<8x1xf32>
    %8 = vector.broadcast %7 : vector<8x1xf32> to vector<8x4xf32>
    %9 = vector.broadcast %3 : vector<1x4xf32> to vector<8x4xf32>
    %10 = arith.addf %8, %9 : vector<8x4xf32>
    %cst_8 = arith.constant 2.000000e+00 : f32
    %11 = vector.broadcast %cst_8 : f32 to vector<8x4xf32>
    %12 = arith.mulf %11, %4 : vector<8x4xf32>
    %13 = arith.subf %10, %12 : vector<8x4xf32>
    %cst_9 = arith.constant 0.000000e+00 : f32
    %14 = vector.broadcast %cst_9 : f32 to vector<8x4xf32>
    %15 = arith.maximumf %13, %14 : vector<8x4xf32>
    %c8_i32 = arith.constant 8 : i32
    %16 = arith.muli %arg0, %c8_i32 : i32
    %17 = tpu.iota {dimensions = array<i32: 0>} : vector<8x1xi32>
    %18 = vector.broadcast %16 : i32 to vector<8x1xi32>
    %19 = arith.addi %18, %17 : vector<8x1xi32>
    %c2_i32 = arith.constant 2 : i32
    %20 = vector.broadcast %c2_i32 : i32 to vector<8x1xi32>
    %21 = arith.cmpi slt, %19, %20 : vector<8x1xi32>
    %cst_10 = arith.constant 0.000000e+00 : f32
    %22 = vector.shape_cast %21 : vector<8x1xi1> to vector<8x1xi1>
    %23 = vector.broadcast %22 : vector<8x1xi1> to vector<8x4xi1>
    %24 = vector.broadcast %cst_10 : f32 to vector<8x4xf32>
    %25 = arith.select %23, %15, %24 : vector<8x4xi1>, vector<8x4xf32>
    %26 = tpu.iota {dimensions = array<i32: 1>} : vector<8x4xi32>
    %27 = vector.broadcast %2 : vector<8x1xi32> to vector<8x4xi32>
    %28 = arith.cmpi eq, %26, %27 : vector<8x4xi32>
    %29 = arith.extui %28 : vector<8x4xi1> to vector<8x4xi32>
    %30 = arith.sitofp %29 : vector<8x4xi32> to vector<8x4xf32>
    %31 = vector.shape_cast %25 : vector<8x4xf32> to vector<1x8x4xf32>
    %cst_11 = arith.constant dense<0.000000e+00> : vector<1xf32>
    %32 = vector.multi_reduction <add>, %31, %cst_11 [1, 2] : vector<1x8x4xf32> to vector<1xf32>
    %33 = vector.shape_cast %32 : vector<1xf32> to vector<1x1x1xf32>
    %34 = vector.extract %33[0, 0, 0] : f32 from vector<1x1x1xf32>
    %35 = vector.broadcast %34 : f32 to vector<1x1xf32>
    %36 = arith.mulf %25, %30 : vector<8x4xf32>
    %37 = vector.shape_cast %36 : vector<8x4xf32> to vector<1x8x4xf32>
    %cst_12 = arith.constant dense<0.000000e+00> : vector<1xf32>
    %38 = vector.multi_reduction <add>, %37, %cst_12 [1, 2] : vector<1x8x4xf32> to vector<1xf32>
    %39 = vector.shape_cast %38 : vector<1xf32> to vector<1x1x1xf32>
    %40 = vector.extract %39[0, 0, 0] : f32 from vector<1x1x1xf32>
    %41 = vector.broadcast %40 : f32 to vector<1x1xf32>
    %cst_13 = arith.constant 1.0333333 : f32
    %42 = vector.broadcast %cst_13 : f32 to vector<1x1xf32>
    %43 = arith.mulf %42, %41 : vector<1x1xf32>
    %cst_14 = arith.constant 0.0333333351 : f32
    %44 = vector.broadcast %cst_14 : f32 to vector<1x1xf32>
    %45 = arith.mulf %44, %35 : vector<1x1xf32>
    %46 = arith.subf %43, %45 : vector<1x1xf32>
    %c0_15 = arith.constant 0 : index
    %c0_16 = arith.constant 0 : index
    %c0_17 = arith.constant 0 : index
    %47 = vector.load %arg5[%c0_15, %c0_16, %c0_17] : memref<1x1x1xf32, #tpu.memory_space<vmem>>, vector<1x1x1xf32>
    %48 = vector.shape_cast %47 : vector<1x1x1xf32> to vector<1x1xf32>
    %49 = vector.shape_cast %46 : vector<1x1xf32> to vector<1x1x1xf32>
    tpu.vector_store %arg5[%c0_15, %c0_16, %c0_17], %49 {strides = array<i32>} : memref<1x1x1xf32, #tpu.memory_space<vmem>>, vector<1x1x1xf32>,
    return
  }
  func.func @transform_0(%arg0: i32) -> (i32, i32) {
    %c0_i32 = arith.constant 0 : i32
    %c0_i32_0 = arith.constant 0 : i32
    return %arg0, %c0_i32 : i32, i32
  }
  func.func @transform_1(%arg0: i32) -> (i32, i32) {
    %c0_i32 = arith.constant 0 : i32
    %c0_i32_0 = arith.constant 0 : i32
    return %arg0, %c0_i32 : i32, i32
  }
  func.func @transform_2(%arg0: i32) -> (i32, i32) {
    %c0_i32 = arith.constant 0 : i32
    %c0_i32_0 = arith.constant 0 : i32
    %c0_i32_1 = arith.constant 0 : i32
    return %c0_i32, %c0_i32_0 : i32, i32
  }
  func.func @transform_3(%arg0: i32) -> (i32, i32) {
    %c0_i32 = arith.constant 0 : i32
    %c0_i32_0 = arith.constant 0 : i32
    %c0_i32_1 = arith.constant 0 : i32
    return %c0_i32, %c0_i32_0 : i32, i32
  }
  func.func @transform_4(%arg0: i32) -> (i32, i32, i32) {
    %c0_i32 = arith.constant 0 : i32
    %c0_i32_0 = arith.constant 0 : i32
    %c0_i32_1 = arith.constant 0 : i32
    return %arg0, %c0_i32, %c0_i32_0 : i32, i32, i32
  }
}

</mosaic_0001>

<bundles_post_ra>
// kernel: tpu_custom_call.1
= control target key start
LH: loop header
LB: loop body
LE: loop exit
PB: predicated region body
PF: predicated region fallthrough
CT: control target
= control target key end

     0   :  { %s1145_s0 = inlined_call_operand.vmem [shape: s32[8,1], index: 0, kind: input, shape index: {}]   ;;  %s1146_s1 = inlined_call_operand.vmem [shape: f32[8,1024], index: 1, kind: input, shape index: {}]   ;;  %s1147_s2 = inlined_call_operand.vmem [shape: f32[1024,4], index: 2, kind: input, shape index: {}]   ;;  %s1148_s3 = inlined_call_operand.vmem [shape: f32[1,4], index: 3, kind: input, shape index: {}]   ;;  %s1149_s4 = inlined_call_operand.hbm [shape: f32[1,1,1], index: 4, kind: output, shape index: {}]  }
   0x1   :  { %v57_v0 = vld [vmem:[%s1147_s2 + $0xf8] sm:$0xff]  ;;  %v56_v4 = vld [vmem:[%s1147_s2 + $0xf0] sm:$0xff]  ;;  %v55_v8 = vld [vmem:[%s1147_s2 + $0xe8] sm:$0xff] }
   0x2   :  { %v89_v1 = vld [vmem:[%s1147_s2 + $0x1f8] sm:$0xff]  ;;  %525 = vmatprep.subr.mxu0 %v57_v0  ;;  %v88_v5 = vld [vmem:[%s1147_s2 + $0x1f0] sm:$0xff]  ;;  %v87_v9 = vld [vmem:[%s1147_s2 + $0x1e8] sm:$0xff] }
   0x3   :  { %v41_v2 = vld [vmem:[%s1147_s2 + $0x78] sm:$0xff]  ;;  %560 = vmatprep.subr.mxu1 %v89_v1  ;;  %v40_v6 = vld [vmem:[%s1147_s2 + $0x70] sm:$0xff]  ;;  %v39_v10 = vld [vmem:[%s1147_s2 + $0x68] sm:$0xff] }
   0x4   :  { %v73_v3 = vld [vmem:[%s1147_s2 + $0x178] sm:$0xff]  ;;  %526 = vmatpush3.msra.mxu0 %v41_v2  ;;  %v72_v7 = vld [vmem:[%s1147_s2 + $0x170] sm:$0xff]  ;;  %v71_v11 = vld [vmem:[%s1147_s2 + $0x168] sm:$0xff] }
   0x5   :  { %561 = vmatpush3.msra.mxu1 %v73_v3  ;;  %527 = vmatprep.subr.mxu0 %v56_v4  ;;  %v54_v12 = vld [vmem:[%s1147_s2 + $0xe0] sm:$0xff]  ;;  %v53_v16 = vld [vmem:[%s1147_s2 + $0xd8] sm:$0xff]  ;;  %v52_v20 = vld [vmem:[%s1147_s2 + $0xd0] sm:$0xff] }
   0x6   :  { %562 = vmatprep.subr.mxu1 %v88_v5  ;;  %528 = vmatpush3.msra.mxu0 %v40_v6  ;;  %v86_v13 = vld [vmem:[%s1147_s2 + $0x1e0] sm:$0xff]  ;;  %v85_v17 = vld [vmem:[%s1147_s2 + $0x1d8] sm:$0xff]  ;;  %v84_v21 = vld [vmem:[%s1147_s2 + $0x1d0] sm:$0xff] }
   0x7   :  { %563 = vmatpush3.msra.mxu1 %v72_v7  ;;  %529 = vmatprep.subr.mxu0 %v55_v8  ;;  %v38_v14 = vld [vmem:[%s1147_s2 + $0x60] sm:$0xff]  ;;  %v37_v18 = vld [vmem:[%s1147_s2 + $0x58] sm:$0xff]  ;;  %v36_v22 = vld [vmem:[%s1147_s2 + $0x50] sm:$0xff] }
   0x8   :  { %564 = vmatprep.subr.mxu1 %v87_v9  ;;  %v70_v15 = vld [vmem:[%s1147_s2 + $0x160] sm:$0xff]  ;;  %530 = vmatpush3.msra.mxu0 %v39_v10  ;;  %v69_v19 = vld [vmem:[%s1147_s2 + $0x158] sm:$0xff]  ;;  %v68_v23 = vld [vmem:[%s1147_s2 + $0x150] sm:$0xff] }
   0x9   :  { %565 = vmatpush3.msra.mxu1 %v71_v11  ;;  %531 = vmatprep.subr.mxu0 %v54_v12  ;;  %v51_v24 = vld [vmem:[%s1147_s2 + $0xc8] sm:$0xff]  ;;  %v50_v28 = vld [vmem:[%s1147_s2 + $0xc0] sm:$0xff]  ;;  %v49_v32 = vld [vmem:[%s1147_s2 + $0xb8] sm:$0xff] }
   0xa   :  { %566 = vmatprep.subr.mxu1 %v86_v13  ;;  %532 = vmatpush3.msra.mxu0 %v38_v14  ;;  %v83_v25 = vld [vmem:[%s1147_s2 + $0x1c8] sm:$0xff]  ;;  %v82_v29 = vld [vmem:[%s1147_s2 + $0x1c0] sm:$0xff]  ;;  %v81_v33 = vld [vmem:[%s1147_s2 + $0x1b8] sm:$0xff] }
   0xb   :  { %567 = vmatpush3.msra.mxu1 %v70_v15  ;;  %533 = vmatprep.subr.mxu0 %v53_v16  ;;  %v35_v26 = vld [vmem:[%s1147_s2 + $0x48] sm:$0xff]  ;;  %v34_v30 = vld [vmem:[%s1147_s2 + $0x40] sm:$0xff]  ;;  %v33_v34 = vld [vmem:[%s1147_s2 + $0x38] sm:$0xff] }
   0xc   :  { %568 = vmatprep.subr.mxu1 %v85_v17  ;;  %534 = vmatpush3.msra.mxu0 %v37_v18  ;;  %v67_v27 = vld [vmem:[%s1147_s2 + $0x148] sm:$0xff]  ;;  %v66_v31 = vld [vmem:[%s1147_s2 + $0x140] sm:$0xff]  ;;  %v65_v35 = vld [vmem:[%s1147_s2 + $0x138] sm:$0xff] }
   0xd   :  { %569 = vmatpush3.msra.mxu1 %v69_v19  ;;  %535 = vmatprep.subr.mxu0 %v52_v20  ;;  %v48_v36 = vld [vmem:[%s1147_s2 + $0xb0] sm:$0xff]  ;;  %v47_v40 = vld [vmem:[%s1147_s2 + $0xa8] sm:$0xff]  ;;  %v46_v44 = vld [vmem:[%s1147_s2 + $0xa0] sm:$0xff] }
   0xe   :  { %570 = vmatprep.subr.mxu1 %v84_v21  ;;  %536 = vmatpush3.msra.mxu0 %v36_v22  ;;  %v80_v37 = vld [vmem:[%s1147_s2 + $0x1b0] sm:$0xff]  ;;  %v79_v41 = vld [vmem:[%s1147_s2 + $0x1a8] sm:$0xff]  ;;  %v78_v45 = vld [vmem:[%s1147_s2 + $0x1a0] sm:$0xff] }
   0xf   :  { %571 = vmatpush3.msra.mxu1 %v68_v23  ;;  %537 = vmatprep.subr.mxu0 %v51_v24  ;;  %v32_v38 = vld [vmem:[%s1147_s2 + $0x30] sm:$0xff]  ;;  %v31_v42 = vld [vmem:[%s1147_s2 + $0x28] sm:$0xff]  ;;  %v30_v46 = vld [vmem:[%s1147_s2 + $0x20] sm:$0xff] }
  0x10   :  { %572 = vmatprep.subr.mxu1 %v83_v25  ;;  %538 = vmatpush3.msra.mxu0 %v35_v26  ;;  %v64_v39 = vld [vmem:[%s1147_s2 + $0x130] sm:$0xff]  ;;  %v63_v43 = vld [vmem:[%s1147_s2 + $0x128] sm:$0xff]  ;;  %v62_v47 = vld [vmem:[%s1147_s2 + $0x120] sm:$0xff] }
  0x11   :  { %573 = vmatpush3.msra.mxu1 %v67_v27  ;;  %539 = vmatprep.subr.mxu0 %v50_v28  ;;  %v45_v48 = vld [vmem:[%s1147_s2 + $0x98] sm:$0xff]  ;;  %v44_v52 = vld [vmem:[%s1147_s2 + $0x90] sm:$0xff]  ;;  %v43_v56 = vld [vmem:[%s1147_s2 + $0x88] sm:$0xff] }
  0x12   :  { %574 = vmatprep.subr.mxu1 %v82_v29  ;;  %540 = vmatpush3.msra.mxu0 %v34_v30  ;;  %v77_v49 = vld [vmem:[%s1147_s2 + $0x198] sm:$0xff]  ;;  %v76_v53 = vld [vmem:[%s1147_s2 + $0x190] sm:$0xff]  ;;  %v75_v57 = vld [vmem:[%s1147_s2 + $0x188] sm:$0xff] }
  0x13   :  { %575 = vmatpush3.msra.mxu1 %v66_v31  ;;  %541 = vmatprep.subr.mxu0 %v49_v32  ;;  %v29_v50 = vld [vmem:[%s1147_s2 + $0x18] sm:$0xff]  ;;  %v28_v54 = vld [vmem:[%s1147_s2 + $0x10] sm:$0xff]  ;;  %v27_v58 = vld [vmem:[%s1147_s2 + $0x8] sm:$0xff] }
  0x14   :  { %576 = vmatprep.subr.mxu1 %v81_v33  ;;  %542 = vmatpush3.msra.mxu0 %v33_v34  ;;  %v61_v51 = vld [vmem:[%s1147_s2 + $0x118] sm:$0xff]  ;;  %v60_v55 = vld [vmem:[%s1147_s2 + $0x110] sm:$0xff]  ;;  %v59_v59 = vld [vmem:[%s1147_s2 + $0x108] sm:$0xff] }
  0x15   :  { %577 = vmatpush3.msra.mxu1 %v65_v35  ;;  %543 = vmatprep.subr.mxu0 %v48_v36  ;;  %v42_v60 = vld [vmem:[%s1147_s2 + $0x80] sm:$0xff]  ;;  %v19_v63 = vld [vmem:[%s1146_s1 + $0x8] sm:$0xff]  ;;  %v21_v1 = vld [vmem:[%s1146_s1 + $0x18] sm:$0xff] }
  0x16   :  { %578 = vmatprep.subr.mxu1 %v80_v37  ;;  %544 = vmatpush3.msra.mxu0 %v32_v38  ;;  %v74_v61 = vld [vmem:[%s1147_s2 + $0x180] sm:$0xff]  ;;  %v20_v3 = vld [vmem:[%s1146_s1 + $0x10] sm:$0xff]  ;;  %v121_v4 = vld [vmem:[%s1147_s2 + $0x2f8] sm:$0xff]  ;;  %v437_v14 = vmul.f32 %v19_v63, %v19_v63  ;;  %v439_v34 = vmul.f32 %v21_v1, %v21_v1 }
  0x17   :  { %579 = vmatpush3.msra.mxu1 %v64_v39  ;;  %545 = vmatprep.subr.mxu0 %v47_v40  ;;  %v26_v62 = vld [vmem:[%s1147_s2] sm:$0xff]  ;;  %v153_v5 = vld [vmem:[%s1147_s2 + $0x3f8] sm:$0xff]  ;;  %v120_v8 = vld [vmem:[%s1147_s2 + $0x2f0] sm:$0xff]  ;;  %v438_v25 = vmul.f32 %v20_v3, %v20_v3 }
  0x18   :  { %580 = vmatprep.subr.mxu1 %v79_v41  ;;  %546 = vmatpush3.msra.mxu0 %v31_v42  ;;  %v58_v0 = vld [vmem:[%s1147_s2 + $0x100] sm:$0xff]  ;;  %v105_v6 = vld [vmem:[%s1147_s2 + $0x278] sm:$0xff]  ;;  %v152_v9 = vld [vmem:[%s1147_s2 + $0x3f0] sm:$0xff] }
  0x19   :  { %581 = vmatpush3.msra.mxu1 %v63_v43  ;;  %547 = vmatprep.subr.mxu0 %v46_v44  ;;  %v18_v2 = vld [vmem:[%s1146_s1] sm:$0xff]  ;;  %v137_v7 = vld [vmem:[%s1147_s2 + $0x378] sm:$0xff]  ;;  %v104_v10 = vld [vmem:[%s1147_s2 + $0x270] sm:$0xff] }
  0x1a   :  { %582 = vmatprep.subr.mxu1 %v78_v45  ;;  %548 = vmatpush3.msra.mxu0 %v30_v46  ;;  %v136_v11 = vld [vmem:[%s1147_s2 + $0x370] sm:$0xff]  ;;  %v119_v12 = vld [vmem:[%s1147_s2 + $0x2e8] sm:$0xff]  ;;  %v436_v15 = vmul.f32 %v18_v2, %v18_v2  ;;  %v118_v18 = vld [vmem:[%s1147_s2 + $0x2e0] sm:$0xff] }
  0x1b   :  { %583 = vmatpush3.msra.mxu1 %v62_v47  ;;  %549 = vmatprep.subr.mxu0 %v45_v48  ;;  %v151_v13 = vld [vmem:[%s1147_s2 + $0x3e8] sm:$0xff]  ;;  %v150_v19 = vld [vmem:[%s1147_s2 + $0x3e0] sm:$0xff]  ;;  %v117_v22 = vld [vmem:[%s1147_s2 + $0x2d8] sm:$0xff] }
  0x1c   :  { %584 = vmatprep.subr.mxu1 %v77_v49  ;;  %550 = vmatpush3.msra.mxu0 %v29_v50  ;;  %v103_v16 = vld [vmem:[%s1147_s2 + $0x268] sm:$0xff]  ;;  %v102_v20 = vld [vmem:[%s1147_s2 + $0x260] sm:$0xff]  ;;  %v149_v23 = vld [vmem:[%s1147_s2 + $0x3d8] sm:$0xff]  ;;  %v444_v24 = vadd.f32 %v437_v14, %v436_v15 }
  0x1d   :  { %585 = vmatpush3.msra.mxu1 %v61_v51  ;;  %551 = vmatprep.subr.mxu0 %v44_v52  ;;  %v135_v17 = vld [vmem:[%s1147_s2 + $0x368] sm:$0xff]  ;;  %v134_v21 = vld [vmem:[%s1147_s2 + $0x360] sm:$0xff]  ;;  %v101_v26 = vld [vmem:[%s1147_s2 + $0x258] sm:$0xff] }
  0x1e   :  { %586 = vmatprep.subr.mxu1 %v76_v53  ;;  %552 = vmatpush3.msra.mxu0 %v28_v54  ;;  %v133_v27 = vld [vmem:[%s1147_s2 + $0x358] sm:$0xff]  ;;  %v116_v28 = vld [vmem:[%s1147_s2 + $0x2d0] sm:$0xff]  ;;  %v115_v32 = vld [vmem:[%s1147_s2 + $0x2c8] sm:$0xff]  ;;  %v445_v35 = vadd.f32 %v444_v24, %v438_v25 }
  0x1f   :  { %587 = vmatpush3.msra.mxu1 %v60_v55  ;;  %553 = vmatprep.subr.mxu0 %v43_v56  ;;  %v148_v29 = vld [vmem:[%s1147_s2 + $0x3d0] sm:$0xff]  ;;  %v147_v33 = vld [vmem:[%s1147_s2 + $0x3c8] sm:$0xff] }
  0x20   :  { %588 = vmatprep.subr.mxu1 %v75_v57  ;;  %554 = vmatpush3.msra.mxu0 %v27_v58  ;;  %v100_v30 = vld [vmem:[%s1147_s2 + $0x250] sm:$0xff]  ;;  %v99_v36 = vld [vmem:[%s1147_s2 + $0x248] sm:$0xff] }
  0x21   :  { %589 = vmatpush3.msra.mxu1 %v59_v59  ;;  %555 = vmatprep.subr.mxu0 %v42_v60  ;;  %v132_v31 = vld [vmem:[%s1147_s2 + $0x350] sm:$0xff]  ;;  %v131_v37 = vld [vmem:[%s1147_s2 + $0x348] sm:$0xff] }
  0x22   :  { %590 = vmatprep.subr.mxu1 %v74_v61  ;;  %556 = vmatpush3.msra.mxu0 %v26_v62 }
  0x23   :  { %220 = vmatprep.mubr.f32.mxu0 %v19_v63  ;;  %591 = vmatpush3.msra.mxu1 %v58_v0 }
  0x24   :  { %290 = vmatprep.mubr.f32.mxu1 %v21_v1  ;;  %221 = vmatmul.mubr.f32.vlgmr.msra.gmra.mxu0 %v18_v2 }
  0x25   :  { %291 = vmatmul.mubr.f32.vlgmr.msra.gmra.mxu1 %v20_v3  ;;  %595 = vmatprep.subr.mxu0 %v121_v4 }
  0x26   :  { %630 = vmatprep.subr.mxu1 %v153_v5  ;;  %596 = vmatpush3.msra.mxu0 %v105_v6 }
  0x27   :  { %631 = vmatpush3.msra.mxu1 %v137_v7  ;;  %597 = vmatprep.subr.mxu0 %v120_v8 }
  0x28   :  { %632 = vmatprep.subr.mxu1 %v152_v9  ;;  %598 = vmatpush3.msra.mxu0 %v104_v10 }
  0x29   :  { %633 = vmatpush3.msra.mxu1 %v136_v11  ;;  %599 = vmatprep.subr.mxu0 %v119_v12 }
  0x2a   :  { %634 = vmatprep.subr.mxu1 %v151_v13  ;;  %600 = vmatpush3.msra.mxu0 %v103_v16 }
  0x2b   :  { %635 = vmatpush3.msra.mxu1 %v135_v17  ;;  %601 = vmatprep.subr.mxu0 %v118_v18 }
  0x2c   :  { %636 = vmatprep.subr.mxu1 %v150_v19  ;;  %602 = vmatpush3.msra.mxu0 %v102_v20 }
  0x2d   :  { %637 = vmatpush3.msra.mxu1 %v134_v21  ;;  %603 = vmatprep.subr.mxu0 %v117_v22 }
  0x2e   :  { %638 = vmatprep.subr.mxu1 %v149_v23  ;;  %604 = vmatpush3.msra.mxu0 %v101_v26 }
  0x2f   :  { %639 = vmatpush3.msra.mxu1 %v133_v27  ;;  %605 = vmatprep.subr.mxu0 %v116_v28 }
  0x30   :  { %640 = vmatprep.subr.mxu1 %v148_v29 }
  0x31   :  { %9 = vsyncpa [#allocation3], 0  ;;  %606 = vmatpush3.msra.mxu0 %v100_v30  ;;  %641 = vmatpush3.msra.mxu1 %v132_v31  ;;  %v114_v38 = vld [vmem:[%s1147_s2 + $0x2c0] sm:$0xff]  ;;  %v113_v42 = vld [vmem:[%s1147_s2 + $0x2b8] sm:$0xff]  ;;  %v446_v45 = vadd.f32 %v445_v35, %v439_v34  ;;  %v695_v23 = vmov 0   ;;  %v464_v35 = vlaneseq  ;;  %vm480_vm2 = vcmask 31744  }
  0x32   :  { %v146_v39 = vld [vmem:[%s1147_s2 + $0x3c0] sm:$0xff]  ;;  %607 = vmatprep.subr.mxu0 %v115_v32  ;;  %642 = vmatprep.subr.mxu1 %v147_v33  ;;  %v145_v43 = vld [vmem:[%s1147_s2 + $0x3b8] sm:$0xff]  ;;  %v112_v49 = vld [vmem:[%s1147_s2 + $0x2b0] sm:$0xff]  ;;  %s697_s29 = smov [#allocation2]   ;;  %vm507_vm3 = vcmask 0  }
  0x33   :  { %v98_v40 = vld [vmem:[%s1147_s2 + $0x240] sm:$0xff]  ;;  %608 = vmatpush3.msra.mxu0 %v99_v36  ;;  %643 = vmatpush3.msra.mxu1 %v131_v37  ;;  %v97_v46 = vld [vmem:[%s1147_s2 + $0x238] sm:$0xff]  ;;  %v144_v50 = vld [vmem:[%s1147_s2 + $0x3b0] sm:$0xff]  ;;  %s515_s30 = sshll.u32 %s697_s29, 4  ;;  %s516_s30 = int_to_ptr.vmem [resolvable:$true] %s515_s30 }
  0x34   :  { %v130_v41 = vld [vmem:[%s1147_s2 + $0x340] sm:$0xff]  ;;  %609 = vmatprep.subr.mxu0 %v114_v38  ;;  %644 = vmatprep.subr.mxu1 %v146_v39  ;;  %v129_v47 = vld [vmem:[%s1147_s2 + $0x338] sm:$0xff]  ;;  %v96_v51 = vld [vmem:[%s1147_s2 + $0x230] sm:$0xff]  ;;  %s673_s5 = scalar_lea.vmem %s516_s30, 16  ;;  %s677_s6 = scalar_lea.vmem %s516_s30, 32 }
  0x35   :  { %v1032_v44 = vld [vmem:[%s1146_s1 + $0x20] sm:$0xff]  ;;  %610 = vmatpush3.msra.mxu0 %v98_v40  ;;  %645 = vmatpush3.msra.mxu1 %v130_v41  ;;  %v128_v52 = vld [vmem:[%s1147_s2 + $0x330] sm:$0xff]  ;;  %v111_v53 = vld [vmem:[%s1147_s2 + $0x2a8] sm:$0xff]  ;;  %p674_p0 = scmp.ne.s32.totalorder %s516_s30, %s673_s5  ;;  %p678_p1 = scmp.lt.s32.totalorder %s516_s30, %s516_s30 }
  0x36   :  { %v440_v48 = vmul.f32 %v1032_v44, %v1032_v44  ;;  %611 = vmatprep.subr.mxu0 %v113_v42  ;;  %646 = vmatprep.subr.mxu1 %v145_v43  ;;  %v143_v54 = vld [vmem:[%s1147_s2 + $0x3a8] sm:$0xff]  ;;  %v110_v60 = vld [vmem:[%s1147_s2 + $0x2a0] sm:$0xff]  ;;  %v109_v0 = vld [vmem:[%s1147_s2 + $0x298] sm:$0xff]  ;;  %v473_v42 = vand.u32 127, %v464_v35  ;;  %p679_p2 = scmp.lt.s32.totalorder %s677_s6, %s673_s5 }
  0x37   :  { %612 = vmatpush3.msra.mxu0 %v97_v46  ;;  %647 = vmatpush3.msra.mxu1 %v129_v47  ;;  %v23_v55 = vld [vmem:[%s1146_s1 + $0x28] sm:$0xff]  ;;  %v142_v61 = vld [vmem:[%s1147_s2 + $0x3a0] sm:$0xff]  ;;  %v141_v1 = vld [vmem:[%s1147_s2 + $0x398] sm:$0xff]  ;;  %v465_v46 = vshrl.u32 %v464_v35, 7 }
  0x38   :  { %613 = vmatprep.subr.mxu0 %v112_v49  ;;  %648 = vmatprep.subr.mxu1 %v144_v50  ;;  %v95_v56 = vld [vmem:[%s1147_s2 + $0x228] sm:$0xff]  ;;  %v441_v58 = vmul.f32 %v23_v55, %v23_v55  ;;  %v447_v59 = vadd.f32 %v446_v45, %v440_v48  ;;  %v94_v62 = vld [vmem:[%s1147_s2 + $0x220] sm:$0xff]  ;;  %v24_v2 = vld [vmem:[%s1146_s1 + $0x30] sm:$0xff]  ;;  %v696_v49 = vmov 0.0   ;;  %p680_p3 = por %p679_p2, %p678_p1 }
  0x39   :  { %v127_v57 = vld [vmem:[%s1147_s2 + $0x328] sm:$0xff]  ;;  %614 = vmatpush3.msra.mxu0 %v96_v51  ;;  %649 = vmatpush3.msra.mxu1 %v128_v52  ;;  %v126_v63 = vld [vmem:[%s1147_s2 + $0x320] sm:$0xff]  ;;  %v93_v3 = vld [vmem:[%s1147_s2 + $0x218] sm:$0xff]  ;;  %v442_v5 = vmul.f32 %v24_v2, %v24_v2  ;;  %vm468_vm1 = vcmp.lt.s32.totalorder %v465_v46, 2 }
  0x3a   :  { %615 = vmatprep.subr.mxu0 %v111_v53  ;;  %650 = vmatprep.subr.mxu1 %v143_v54  ;;  %v125_v4 = vld [vmem:[%s1147_s2 + $0x318] sm:$0xff]  ;;  %v448_v6 = vadd.f32 %v447_v59, %v441_v58  ;;  %v108_v7 = vld [vmem:[%s1147_s2 + $0x290] sm:$0xff]  ;;  %v107_v11 = vld [vmem:[%s1147_s2 + $0x288] sm:$0xff]  ;;  %p681_p4 = pnand %p680_p3, %p674_p0 }
  0x3b   :  { %616 = vmatpush3.msra.mxu0 %v95_v56  ;;  %651 = vmatpush3.msra.mxu1 %v127_v57  ;;  %v140_v8 = vld [vmem:[%s1147_s2 + $0x390] sm:$0xff]  ;;  %v139_v12 = vld [vmem:[%s1147_s2 + $0x388] sm:$0xff]  ;;  %v25_v13 = vld [vmem:[%s1146_s1 + $0x38] sm:$0xff] }
  0x3c   :  { %617 = vmatprep.subr.mxu0 %v110_v60  ;;  %652 = vmatprep.subr.mxu1 %v142_v61  ;;  %v92_v9 = vld [vmem:[%s1147_s2 + $0x210] sm:$0xff]  ;;  %v91_v14 = vld [vmem:[%s1147_s2 + $0x208] sm:$0xff]  ;;  %v443_v16 = vmul.f32 %v25_v13, %v25_v13  ;;  %v449_v17 = vadd.f32 %v448_v6, %v442_v5  ;;  %v106_v18 = vld [vmem:[%s1147_s2 + $0x280] sm:$0xff] }
  0x3d   :  { %618 = vmatpush3.msra.mxu0 %v94_v62  ;;  %653 = vmatpush3.msra.mxu1 %v126_v63  ;;  %v124_v10 = vld [vmem:[%s1147_s2 + $0x310] sm:$0xff]  ;;  %v123_v15 = vld [vmem:[%s1147_s2 + $0x308] sm:$0xff]  ;;  %v138_v19 = vld [vmem:[%s1147_s2 + $0x380] sm:$0xff] }
  0x3e   :  { %619 = vmatprep.subr.mxu0 %v109_v0  ;;  %654 = vmatprep.subr.mxu1 %v141_v1  ;;  %v90_v20 = vld [vmem:[%s1147_s2 + $0x200] sm:$0xff]  ;;  %v450_v22 = vadd.f32 %v449_v17, %v443_v16 }
  0x3f   :  { %620 = vmatpush3.msra.mxu0 %v93_v3  ;;  %655 = vmatpush3.msra.mxu1 %v125_v4  ;;  %v122_v21 = vld [vmem:[%s1147_s2 + $0x300] sm:$0xff] }
  0x40   :  { %621 = vmatprep.subr.mxu0 %v108_v7  ;;  %656 = vmatprep.subr.mxu1 %v140_v8  ;;  %v154_v24 = vld [vmem:[%s1145_s0] sm:$0xff] }
  0x41   :  { %622 = vmatpush3.msra.mxu0 %v92_v9  ;;  %657 = vmatpush3.msra.mxu1 %v124_v10  ;;  %v523_v39 = vld [vmem:[%s1148_s3] ss:$0 sm:$0xff] }
  0x42   :  { %623 = vmatprep.subr.mxu0 %v107_v11  ;;  %658 = vmatprep.subr.mxu1 %v139_v12 }
  0x43   :  { %624 = vmatpush3.msra.mxu0 %v91_v14  ;;  %659 = vmatpush3.msra.mxu1 %v123_v15 }
  0x44   :  { %625 = vmatprep.subr.mxu0 %v106_v18  ;;  %660 = vmatprep.subr.mxu1 %v138_v19 }
  0x45   :  { %626 = vmatpush3.msra.mxu0 %v90_v20  ;;  %360 = vmatprep.mubr.f32.mxu0 %v23_v55 }
  0x46   :  { %661 = vmatpush3.msra.mxu1 %v122_v21  ;;  %430 = vmatprep.mubr.f32.mxu1 %v25_v13 }
  0x47   :  { %361 = vmatmul.mubr.f32.vlgmr.msra.gmra.mxu0 %v1032_v44  ;;  %431 = vmatmul.mubr.f32.vlgmr.msra.gmra.mxu1 %v24_v2 }
  0x48   :  { %451 = vadd.xlane.f32.xlu0 %v450_v22 }
  0x49   :  { %672 = vset.pattern.permute.xlu0 %v695_v23 }
  0x5e   :  { %475 = vperm.xlu0 %672, %v154_v24  }
  0xd1   :  { %v452_v38 = vpop.xlane.xlu0 %451 }
  0xd2   :  { %v459_v44 = vadd.f32 %v523_v39, %v452_v38 }
  0xd9   :  { %v476_v45 = vpop.permute.xlu0 %475 }
  0xda   :  { %vm477_vm0 = vcmp.eq.s32.totalorder %v473_v42, %v476_v45 }
  0xdb   :  { %v524_v50 = vsel %vm477_vm0, 1.0, %v696_v49 }
  0xe4   :  { %v557_v25 = vpop.f32.mrf.mxu0 }
  0xe5   :  { %v592_v26 = vpop.f32.mrf.mxu1 }
  0xe6   :  { %v558_v27 = vpop.f32.mrf.mxu0 }
  0xe7   :  { %v593_v28 = vpop.f32.mrf.mxu1  ;;  %v559_v29 = vadd.f32 %v558_v27, %v557_v25 }
  0xe8   :  { %v594_v30 = vadd.f32 %v593_v28, %v592_v26 }
  0xea   :  { %v293_v36 = vadd.f32 %v594_v30, %v559_v29 }
 0x107   :  { %v627_v31 = vpop.f32.mrf.mxu0  ;;  %v662_v32 = vpop.f32.mrf.mxu1 }
 0x109   :  { %v628_v33 = vpop.f32.mrf.mxu0  ;;  %v663_v34 = vpop.f32.mrf.mxu1 }
 0x10a   :  { %v629_v37 = vadd.f32 %v628_v33, %v627_v31  ;;  %v664_v41 = vadd.f32 %v663_v34, %v662_v32 }
 0x10c   :  { %v363_v40 = vadd.f32 %v629_v37, %v293_v36 }
 0x10e   :  { %v433_v43 = vadd.f32 %v664_v41, %v363_v40 }
 0x110   :  { %v460_v47 = vmul.f32 2.0, %v433_v43 }
 0x112   :  { %v461_v48 = vsub.f32 %v459_v44, %v460_v47 }
 0x114   :  { %v462_v51 = vmax.f32 %v461_v48, 0.0 }
 0x116   :  { %v471_v52 = vsel %vm468_vm1, %v462_v51, 0.0 }
 0x117   :  { %v481_v53 = vsel %vm480_vm2, %v471_v52, 0.0  ;;  %v492_v54 = vmul.f32 %v524_v50, %v471_v52 }
 0x118   :  { %482 = vadd.xlane.f32.xlu1 %v481_v53 }
 0x119   :  { %v493_v55 = vsel %vm480_vm2, %v492_v54, 0.0 }
 0x11c   :  { %494 = vadd.xlane.f32.xlu1 %v493_v55 }
 0x1a1   :  { %v483_v56 = vpop.xlane.xlu1 %482 }
 0x1a2   :  { %v484_v57 = vrot.slane %v483_v56, 4 }
 0x1a4   :  { %v485_v58 = vadd.f32 %v484_v57, %v483_v56 }
 0x1a5   :  { %v495_v59 = vpop.xlane.xlu1 %494 }
 0x1a6   :  { %v486_v60 = vrot.slane %v485_v58, 2  ;;  %v496_v61 = vrot.slane %v495_v59, 4 }
 0x1a8   :  { %v497_v62 = vadd.f32 %v496_v61, %v495_v59  ;;  %v487_v63 = vadd.f32 %v486_v60, %v485_v58 }
 0x1aa   :  { %v498_v0 = vrot.slane %v497_v62, 2  ;;  %v488_v1 = vrot.slane %v487_v63, 1 }
 0x1ac   :  { %v499_v2 = vadd.f32 %v498_v0, %v497_v62  ;;  %v489_v3 = vadd.f32 %v488_v1, %v487_v63 }
 0x1ae   :  { %665 = vpush %v489_v3  ;;  %v500_v4 = vrot.slane %v499_v2, 1 }
 0x1b0   :  { %v501_v5 = vadd.f32 %v500_v4, %v499_v2 }
 0x1b2   :  { %667 = vpush %v501_v5 }
 0x1df   :  { %s666_s0 = spop %665 }
 0x1e0   :  { %v491_v6 = vstv %s666_s0 }
 0x1e1   :  { %v505_v8 = vmul.f32 0.033333335, %v491_v6 }
 0x1e3   :  { %s668_s3 = spop %667 }
 0x1e4   :  { %v503_v7 = vstv %s668_s3 }
 0x1e5   :  { %v504_v9 = vmul.f32 1.0333333, %v503_v7 }
 0x1e7   :  { %v506_v10 = vsub.f32 %v504_v9, %v505_v8 }
 0x1e9   :  { %508 = vst.msk [vmem:[#allocation2] sm:$0x1] %vm507_vm3, %v506_v10 }
 0x1ea   :  { %684 = shalt.err (!%p681_p4)
}
 0x1eb   :  { %518 = dma.vmem_to_hbm [thread:$0]  %s516_s30, 16, %s1149_s4, [#allocation3]  }
 0x1ec   :  { %693 = dma.done.wait [#allocation3], 16  }
 0x1ed   :  { %694 = vsyncadd [#allocation3], 4294967280 }
 0x1ee   :  { %522 = vsyncpa [#allocation3], 1 }

</bundles_post_ra>
